<compile_context>
chip_gen: v5e
topology: v5e:2x2
jax: 0.10.0
libtpu: 0.0.40
codegen_flags: <defaults>
</compile_context>

<pallas_src>
import functools

import jax
import jax.numpy as jnp
from jax.experimental import pallas as pl
from jax.experimental.pallas import tpu as pltpu


# ----------------------------------------------------------------------------
# small helpers
# ----------------------------------------------------------------------------
def _round_up(x, m):
    return (x + m - 1) // m * m


def _pad2(x, rows, cols):
    return jnp.pad(x, ((0, rows - x.shape[0]), (0, cols - x.shape[1])))


@functools.lru_cache(maxsize=1)
def _vmem_limit_bytes():
    """Per-generation VMEM budget: ~85% of physical, capped, safe fallback."""
    phys = None
    try:
        info = pltpu.get_tpu_info()
        phys = getattr(info, "vmem_capacity_bytes", None)
    except Exception:
        phys = None
    if not phys:
        phys = 64 * 1024 * 1024           # conservative (v7x-sized) if unknown
    limit = int(min(phys * 0.85, 110 * 1024 * 1024))
    return max(limit, 32 * 1024 * 1024)


def _gcn_tiles(n, f, out_pad, out_itemsize, vmem_limit):
    """Row tile tm, adjacency column (K) tile tk, padded node count n_pad."""
    if n >= 512:
        tm = 512
    elif n >= 256:
        tm = 256
    elif n >= 128:
        tm = 128
    else:
        tm = 16                            # bf16 sublane granule (not 8)
    n_pad = _round_up(n, tm)
    if n_pad <= 2048:
        return tm, n_pad, n_pad            # single K block: whole row strip in VMEM
    # K-tiling: cap the adjacency working set independently of N.
    resident = (2 * n_pad * f * 2          # hidden ping/pong (bf16)
                + n_pad * out_pad * out_itemsize   # resident output block
                + tm * f * 4               # f32 accumulator
                + 4 * f * f * 2)           # double-buffered conv weights
    budget_a = vmem_limit - resident - (6 << 20)   # margin for Mosaic scratch, sems
    tk = 128
    while tk < 2048 and (4 * tm * (2 * tk) + 4 * (2 * tk) * f) <= budget_a:
        tk *= 2                            # powers of two so lcm(tm, tk) == max
    n_pad = _round_up(n, max(tm, tk))
    return tm, tk, n_pad


def _edge_tile(e):
    # Single lane tile when the edge dim is small; wide (8192) tiles otherwise so the
    # ~0.35us per-grid-step overhead is amortized.
    return 8192 if e >= 8192 else _round_up(e, 128)


# ----------------------------------------------------------------------------
# Dense adjacency glue (plain JAX): built directly in padded bf16 form.
# ----------------------------------------------------------------------------
def _build_adj_padded(edge_index, edge_weight, n, n_pad):
    # TODO(synk): for E << N^2 a sparse (CSR + scalar-prefetch gather) kernel would
    # avoid materializing the dense N x N adjacency entirely.
    self_idx = jnp.arange(n, dtype=edge_index.dtype)
    src = jnp.concatenate([edge_index[0], self_idx])
    dst = jnp.concatenate([edge_index[1], self_idx])           # self loops via scatter
    w = jnp.concatenate([edge_weight, jnp.ones((n,), edge_weight.dtype)])
    a = jnp.zeros((n_pad, n_pad), jnp.float32).at[dst, src].add(w)
    a = a / jnp.maximum(a.sum(axis=1, keepdims=True), 1e-6)    # row-normalize
    return a.astype(jnp.bfloat16)                              # padded rows/cols stay 0


# ----------------------------------------------------------------------------
# Fused GCN-module kernel: L graph-conv layers + row-local head MLP, one call.
#   grid = (layer, row_tile, k_tile)  -- K (adjacency columns) innermost.
#   Per step: acc(tm,f) += A(tm,tk) @ H_l(k block).  On the last K step the layer is
#   finished as relu(acc @ W_l + b_l); intermediate layers write the row tile into a
#   ping-pong hidden buffer, the last layer runs the row-local head MLP and writes a
#   lane-dense (tm, out_pad) slab of the resident output block.
# ----------------------------------------------------------------------------
def _make_gcn_kernel(n_conv, nk, tm, tk, head_acts):
    n_head = len(head_acts)
    bf16 = jnp.bfloat16

    def kernel(x_ref, a_ref, wc_ref, bc_ref, *rest):
        head_refs = rest[: 2 * n_head]
        o_ref = rest[2 * n_head]
        acc_ref, h0_ref, h1_ref = rest[2 * n_head + 1:]

        l = pl.program_id(0)          # conv layer
        i = pl.program_id(1)          # adjacency row tile
        k = pl.program_id(2)          # adjacency column (K) tile

        @pl.when(k == 0)
        def _zero_acc():
            acc_ref[...] = jnp.zeros_like(acc_ref)

        col0 = pl.multiple_of(k * tk, tk)

        # ---- accumulate A_tile @ H_l[k block] (f32 accumulation) -------------
        @pl.when(l == 0)
        def _acc_from_x():
            acc_ref[...] += jnp.dot(a_ref[...], x_ref[...],
                                    preferred_element_type=jnp.float32)

        @pl.when((l > 0) & (l % 2 == 1))      # H_l (l odd) lives in h1
        def _acc_from_h1():
            acc_ref[...] += jnp.dot(a_ref[...], h1_ref[pl.ds(col0, tk), :],
                                    preferred_element_type=jnp.float32)

        @pl.when((l > 0) & (l % 2 == 0))      # H_l (l even, > 0) lives in h0
        def _acc_from_h0():
            acc_ref[...] += jnp.dot(a_ref[...], h0_ref[pl.ds(col0, tk), :],
                                    preferred_element_type=jnp.float32)

        # ---- last K block: finish the layer for this row tile ----------------
        @pl.when(k == nk - 1)
        def _finish():
            w = wc_ref[0]                     # (f, f) bf16 (zero padded)
            b = bc_ref[0]                     # (1, f) f32
            y = jnp.dot(acc_ref[...].astype(bf16), w,
                        preferred_element_type=jnp.float32) + b
            h_new = jnp.maximum(y, 0.0)       # (tm, f) f32
            row0 = pl.multiple_of(i * tm, tm)

            @pl.when(l < n_conv - 1)
            def _store_hidden():
                hb = h_new.astype(bf16)

                @pl.when(l % 2 == 0)          # H_{l+1} (odd) goes to h1
                def _():
                    h1_ref[pl.ds(row0, tm), :] = hb

                @pl.when(l % 2 == 1)          # H_{l+1} (even) goes to h0
                def _():
                    h0_ref[pl.ds(row0, tm), :] = hb

            @pl.when(l == n_conv - 1)
            def _head():
                z = h_new
                for li in range(n_head):
                    wh = head_refs[2 * li][...]
                    bh = head_refs[2 * li + 1][...]
                    z = jnp.dot(z.astype(wh.dtype), wh,
                                preferred_element_type=jnp.float32) + bh
                    if head_acts[li] == "relu":
                        z = jnp.maximum(z, 0.0)
                    elif head_acts[li] == "sigmoid":
                        z = jax.nn.sigmoid(z)
                o_ref[pl.ds(row0, tm), :] = z.astype(o_ref.dtype)

    return kernel


def _gcn_module(x, edge_index, edge_weight, conv_w, conv_b, head_wb, head_acts,
                out_dim, out_dtype):
    """act(A @ ... relu(A @ X @ W0 + b0) ... ) followed by a row-local head MLP."""
    n = x.shape[0]
    f = conv_w.shape[-1]
    n_conv = conv_w.shape[0]
    out_pad = _round_up(out_dim, 128)                  # lane-dense output stores
    vmem_limit = _vmem_limit_bytes()
    tm, tk, n_pad = _gcn_tiles(n, f, out_pad, jnp.dtype(out_dtype).itemsize,
                               vmem_limit)
    nk = n_pad // tk

    a_pad = _build_adj_padded(edge_index, edge_weight, n, n_pad)   # (n_pad, n_pad) bf16
    x_pad = _pad2(x.astype(jnp.bfloat16), n_pad, f)                # (n_pad, f) bf16

    kernel = _make_gcn_kernel(n_conv, nk, tm, tk, head_acts)

    in_specs = [
        # X is K-tiled like the adjacency columns (read once in layer 0, then parked).
        pl.BlockSpec((tk, f), lambda l, i, k: (jnp.where(l == 0, k, 0), 0)),
        pl.BlockSpec((tm, tk), lambda l, i, k: (i, k)),            # A tile, pipelined
        pl.BlockSpec((1, f, f), lambda l, i, k: (l, 0, 0)),        # conv W of layer l
        pl.BlockSpec((1, 1, f), lambda l, i, k: (l, 0, 0)),        # conv b of layer l
    ]
    args = [x_pad, a_pad, conv_w, conv_b]
    for w, b in head_wb:
        in_specs += [pl.BlockSpec(w.shape, lambda l, i, k: (0, 0)),
                     pl.BlockSpec(b.shape, lambda l, i, k: (0, 0))]
        args += [w, b]

    out = pl.pallas_call(
        kernel,
        out_shape=jax.ShapeDtypeStruct((n_pad, out_pad), out_dtype),
        grid=(n_conv, n_pad // tm, nk),
        in_specs=in_specs,
        # Output stays VMEM-resident for the whole grid (single lane-dense writeback).
        out_specs=pl.BlockSpec((n_pad, out_pad), lambda l, i, k: (0, 0)),
        scratch_shapes=[
            pltpu.VMEM((tm, f), jnp.float32),        # A @ H accumulator
            pltpu.VMEM((n_pad, f), jnp.bfloat16),    # hidden ping (H_2, H_4, ...)
            pltpu.VMEM((n_pad, f), jnp.bfloat16),    # hidden pong (H_1, H_3, ...)
        ],
        compiler_params=pltpu.CompilerParams(
            # Hidden state carried in scratch across tiles/layers -> all "arbitrary".
            # TODO(synk): on v7x, split the row-tile axis across the two TensorCores
            # (core_map + VMEM_SHARED hidden state) for ~2x on this kernel.
            dimension_semantics=("arbitrary", "arbitrary", "arbitrary"),
            vmem_limit_bytes=vmem_limit,
        ),
    )(*args)
    return out[:n, :out_dim]


# ----------------------------------------------------------------------------
# Fused edge-wise MLPs in transposed [features, edges] layout.
# Lane-dense (1, E_pad) output, wide edge tiles on lanes, grid marked "parallel".
# ----------------------------------------------------------------------------
def _make_edge_mlp_kernel(n_hidden):
    def kernel(x_ref, *rest):
        o_ref = rest[-1]
        h = x_ref[...]                                           # (d_in, TE) bf16
        for li in range(n_hidden):
            w = rest[2 * li][...]                                # (h, d_in) bf16
            b = rest[2 * li + 1][...]                            # (h, 1)   f32
            z = jnp.dot(w, h, preferred_element_type=jnp.float32) + b
            h = jnp.maximum(z, 0.0).astype(jnp.bfloat16)
        w = rest[2 * n_hidden][...]                              # (1, h)
        b = rest[2 * n_hidden + 1][...]                          # (1, 1)
        y = jnp.dot(w, h, preferred_element_type=jnp.float32) + b
        o_ref[...] = jax.nn.sigmoid(y)                           # (1, TE) lane-dense

    return kernel


def _edge_mlp(x_edges, layers, out_layer):
    """sigmoid(MLP(edge_attr)) -> [E], whole stack fused in one pallas_call."""
    e, d_in = x_edges.shape
    te = _edge_tile(e)
    e_pad = _round_up(e, te)
    x_t = jnp.pad(x_edges, ((0, e_pad - e), (0, 0))).T.astype(jnp.bfloat16)

    kernel = _make_edge_mlp_kernel(len(layers))
    in_specs = [pl.BlockSpec((d_in, te), lambda i: (0, i))]
    args = [x_t]
    for w, b in list(layers) + [out_layer]:
        in_specs += [pl.BlockSpec(w.shape, lambda i: (0, 0)),
                     pl.BlockSpec(b.shape, lambda i: (0, 0))]
        args += [w, b]

    out = pl.pallas_call(
        kernel,
        out_shape=jax.ShapeDtypeStruct((1, e_pad), jnp.float32),
        grid=(e_pad // te,),
        in_specs=in_specs,
        out_specs=pl.BlockSpec((1, te), lambda i: (0, i)),
        compiler_params=pltpu.CompilerParams(
            dimension_semantics=("parallel",),
            vmem_limit_bytes=_vmem_limit_bytes(),
        ),
    )(*args)
    return out[0, :e]


def _edge_updater_kernel(hs_ref, hd_ref, w1s_ref, w1d_ref, b1_ref, w2_ref, b2_ref,
                         o_ref):
    # relu(W1s @ hs + W1d @ hd + b1)  ==  relu(concat(hs,hd) @ W1 + b1)^T
    z = (jnp.dot(w1s_ref[...], hs_ref[...], preferred_element_type=jnp.float32)
         + jnp.dot(w1d_ref[...], hd_ref[...], preferred_element_type=jnp.float32)
         + b1_ref[...])
    z = jnp.maximum(z, 0.0).astype(jnp.bfloat16)
    y = jnp.dot(w2_ref[...], z, preferred_element_type=jnp.float32) + b2_ref[...]
    o_ref[...] = jax.nn.sigmoid(y)


def _edge_updater(hs, hd, w1s, w1d, b1, w2, b2):
    e, hg = hs.shape
    te = _edge_tile(e)
    e_pad = _round_up(e, te)
    hs_t = jnp.pad(hs, ((0, e_pad - e), (0, 0))).T.astype(jnp.bfloat16)
    hd_t = jnp.pad(hd, ((0, e_pad - e), (0, 0))).T.astype(jnp.bfloat16)

    out = pl.pallas_call(
        _edge_updater_kernel,
        out_shape=jax.ShapeDtypeStruct((1, e_pad), jnp.float32),
        grid=(e_pad // te,),
        in_specs=[pl.BlockSpec((hg, te), lambda i: (0, i)),
                  pl.BlockSpec((hg, te), lambda i: (0, i)),
                  pl.BlockSpec(w1s.shape, lambda i: (0, 0)),
                  pl.BlockSpec(w1d.shape, lambda i: (0, 0)),
                  pl.BlockSpec(b1.shape, lambda i: (0, 0)),
                  pl.BlockSpec(w2.shape, lambda i: (0, 0)),
                  pl.BlockSpec(b2.shape, lambda i: (0, 0))],
        out_specs=pl.BlockSpec((1, te), lambda i: (0, i)),
        compiler_params=pltpu.CompilerParams(
            dimension_semantics=("parallel",),
            vmem_limit_bytes=_vmem_limit_bytes(),
        ),
    )(hs_t, hd_t, w1s, w1d, b1, w2, b2)
    return out[0, :e]


# ----------------------------------------------------------------------------
# Parameter init (deterministic, in-script)
# ----------------------------------------------------------------------------
def _init_linear(key, fan_in, fan_out):
    kw, kb = jax.random.split(key)
    scale = 1.0 / jnp.sqrt(jnp.float32(fan_in))
    w = jax.random.uniform(kw, (fan_in, fan_out), jnp.float32, -scale, scale)
    b = jax.random.uniform(kb, (fan_out,), jnp.float32, -scale, scale)
    return w, b


class GN2DI:
    """JAX/Pallas re-implementation of the PyTorch GN2DI module (eval mode)."""

    def __init__(self, key, num_weights, hidden_dim_pre_weight, num_lay_pre_weight,
                 in_channel_gl, num_conv_lay_gl, hidden_dim_conv_gl, hidden_dim_gl,
                 in_channel_imp, num_conv_lay_imp, hidden_dim_conv_imp,
                 hidden_dim_readout_imp, hidden_dim_updater,
                 dropout_pre_weight=0.2, dropout_gl=0.2, dropout_imp=0.2):
        # TODO(synk): dropout layers are identity here (eval-mode forward).
        assert num_conv_lay_gl >= 1 and num_conv_lay_imp >= 1
        keys = iter(jax.random.split(key, 64))
        bf16 = jnp.bfloat16

        self.hidden_gl = hidden_dim_gl
        self.in_channel_imp = in_channel_imp

        # --- PreWeight MLP: stored transposed [out, in] bf16, bias [out, 1] f32 ---
        self.pw_layers = []
        d = num_weights
        for _ in range(num_lay_pre_weight):
            w, b = _init_linear(next(keys), d, hidden_dim_pre_weight)
            self.pw_layers.append((w.T.astype(bf16), b.reshape(-1, 1)))
            d = hidden_dim_pre_weight
        w, b = _init_linear(next(keys), d, 1)
        self.pw_out = (w.T.astype(bf16), b.reshape(1, 1))

        # --- conv stacks padded to a uniform width F, stacked [L, F, F] -----------
        def build_conv_stack(in_ch, n_lay, hidden):
            f = _round_up(max(in_ch, hidden), 8)
            ws, bs = [], []
            d_in = in_ch
            for _ in range(n_lay):
                w, b = _init_linear(next(keys), d_in, hidden)
                ws.append(_pad2(w, f, f))
                bs.append(jnp.pad(b, (0, f - hidden)).reshape(1, f))
                d_in = hidden
            conv_w = jnp.stack(ws).astype(bf16)          # [L, F, F] bf16
            conv_b = jnp.stack(bs)                       # [L, 1, F] f32
            return f, conv_w, conv_b

        # --- GraphLearner ----------------------------------------------------------
        self.f_gl, self.gl_conv_w, self.gl_conv_b = build_conv_stack(
            in_channel_gl, num_conv_lay_gl, hidden_dim_conv_gl)
        gl_out_pad = _round_up(hidden_dim_gl, 128)       # lane-dense head output
        w, b = _init_linear(next(keys), hidden_dim_conv_gl, hidden_dim_gl)
        self.gl_emb = (_pad2(w, self.f_gl, gl_out_pad).astype(bf16),
                       jnp.pad(b, (0, gl_out_pad - hidden_dim_gl)).reshape(1, -1))

        # edge updater: split W1 so no concat is needed, transposed layout
        w1, b1 = _init_linear(next(keys), 2 * hidden_dim_gl, hidden_dim_updater)
        w2, b2 = _init_linear(next(keys), hidden_dim_updater, 1)
        self.gl_upd_w1s = w1[:hidden_dim_gl].T.astype(bf16)   # (hu, hidden_gl)
        self.gl_upd_w1d = w1[hidden_dim_gl:].T.astype(bf16)
        self.gl_upd_b1 = b1.reshape(-1, 1)
        self.gl_upd_w2 = w2.T.astype(bf16)                    # (1, hu)
        self.gl_upd_b2 = b2.reshape(1, 1)

        # --- Imputation: conv stack + 2-layer readout -----------------------------
        self.f_imp, self.imp_conv_w, self.imp_conv_b = build_conv_stack(
            in_channel_imp, num_conv_lay_imp, hidden_dim_conv_imp)
        imp_out_pad = _round_up(in_channel_imp, 128)
        w, b = _init_linear(next(keys), hidden_dim_conv_imp, hidden_dim_readout_imp)
        self.imp_read1 = (_pad2(w, self.f_imp, hidden_dim_readout_imp).astype(bf16),
                          b.reshape(1, -1))
        w, b = _init_linear(next(keys), hidden_dim_readout_imp, in_channel_imp)
        self.imp_read2 = (_pad2(w, hidden_dim_readout_imp, imp_out_pad).astype(bf16),
                          jnp.pad(b, (0, imp_out_pad - in_channel_imp)).reshape(1, -1))

        self.edge_index = None
        self.edge_weight = None

    # --- PreWeight ---------------------------------------------------------
    def pre_weighting(self, edge_attr):
        return _edge_mlp(edge_attr, self.pw_layers, self.pw_out)        # [E]

    # --- GraphLearner ------------------------------------------------------
    def gl_module(self, static_node_features, edge_index, edge_weight):
        h = _gcn_module(static_node_features, edge_index, edge_weight,
                        self.gl_conv_w, self.gl_conv_b,
                        [self.gl_emb], ("relu",),
                        self.hidden_gl, jnp.bfloat16)        # [N, hidden_gl] bf16
        # TODO(synk): endpoint gather stays in XLA; at scale fuse it into the updater
        # kernel with scalar-prefetched edge_index + manual row-gather DMA.
        hs = h[edge_index[0]]
        hd = h[edge_index[1]]
        return _edge_updater(hs, hd, self.gl_upd_w1s, self.gl_upd_w1d,
                             self.gl_upd_b1, self.gl_upd_w2, self.gl_upd_b2)  # [E]

    # --- Imputation --------------------------------------------------------
    def imp_module(self, dynamic_node_features, edge_index, edge_weight):
        return _gcn_module(dynamic_node_features, edge_index, edge_weight,
                           self.imp_conv_w, self.imp_conv_b,
                           [self.imp_read1, self.imp_read2], ("relu", "none"),
                           self.in_channel_imp, jnp.float32)            # [N, C_imp]

    def impute(self, dynamic_node_features):
        return self.imp_module(dynamic_node_features, self.edge_index, self.edge_weight)

    def forward(self, static_node_features, dynamic_node_features, edge_index,
                edge_weight):
        edge_weight = self.pre_weighting(edge_weight)
        edge_weight = self.gl_module(static_node_features, edge_index, edge_weight)
        # TODO(synk): mutating self mirrors the PyTorch module but blocks jax.jit of
        # the whole pipeline; a functional variant would return edge_weight instead.
        self.edge_index = edge_index
        self.edge_weight = edge_weight
        return self.imp_module(dynamic_node_features, edge_index, edge_weight)


# ----------------------------------------------------------------------------
# Pure-JAX reference (f32) for a loose numerical cross-check of the fused kernels
# ----------------------------------------------------------------------------
def _reference_forward(m, xs, xd, edge_index, edge_attr):
    f32 = jnp.float32

    def build_adj_ref(ei, ew, n):
        a = jnp.zeros((n, n), f32).at[ei[1], ei[0]].add(ew)
        a = a + jnp.eye(n, dtype=f32)
        return a / jnp.maximum(a.sum(axis=1, keepdims=True), 1e-6)

    def edge_mlp_ref(x, layers, out):
        h = x
        for w, b in layers:
            h = jnp.maximum(h @ w.astype(f32).T + b[:, 0], 0.0)
        w, b = out
        return jax.nn.sigmoid(h @ w.astype(f32).T + b[:, 0])[:, 0]

    def gcn_ref(a, x, conv_w, conv_b, heads, acts, out_dim):
        f = conv_w.shape[-1]
        h = jnp.pad(x, ((0, 0), (0, f - x.shape[1])))
        for l in range(conv_w.shape[0]):
            h = jnp.maximum(a @ (h @ conv_w[l].astype(f32)) + conv_b[l], 0.0)
        for (w, b), act in zip(heads, acts):
            h = h @ w.astype(f32) + b
            if act == "relu":
                h = jnp.maximum(h, 0.0)
        return h[:, :out_dim]

    ew1 = edge_mlp_ref(edge_attr, m.pw_layers, m.pw_out)
    a = build_adj_ref(edge_index, ew1, xs.shape[0])
    h = gcn_ref(a, xs, m.gl_conv_w, m.gl_conv_b, [m.gl_emb], ("relu",), m.hidden_gl)
    hs, hd = h[edge_index[0]], h[edge_index[1]]
    z = jnp.maximum(hs @ m.gl_upd_w1s.astype(f32).T
                    + hd @ m.gl_upd_w1d.astype(f32).T + m.gl_upd_b1[:, 0], 0.0)
    ew2 = jax.nn.sigmoid(z @ m.gl_upd_w2.astype(f32).T + m.gl_upd_b2[:, 0])[:, 0]
    a2 = build_adj_ref(edge_index, ew2, xd.shape[0])
    return gcn_ref(a2, xd, m.imp_conv_w, m.imp_conv_b,
                   [m.imp_read1, m.imp_read2], ("relu", "none"), m.in_channel_imp)


# ----------------------------------------------------------------------------
if __name__ == "__main__":
    key = jax.random.PRNGKey(0)
    k_model, k_ei, k_ew, k_s, k_d = jax.random.split(key, 5)

    N, E = 16, 32                 # nodes, edges
    NUM_WEIGHTS = 4               # per-edge attribute dim
    IN_GL, IN_IMP = 8, 8          # static / dynamic node feature dims

    model = GN2DI(
        k_model,
        num_weights=NUM_WEIGHTS, hidden_dim_pre_weight=16, num_lay_pre_weight=2,
        in_channel_gl=IN_GL, num_conv_lay_gl=2, hidden_dim_conv_gl=16, hidden_dim_gl=16,
        in_channel_imp=IN_IMP, num_conv_lay_imp=2, hidden_dim_conv_imp=16,
        hidden_dim_readout_imp=16, hidden_dim_updater=16,
    )

    edge_index = jax.random.randint(k_ei, (2, E), 0, N, dtype=jnp.int32)
    edge_weight = jax.random.uniform(k_ew, (E, NUM_WEIGHTS), jnp.float32, 0.1, 1.0)
    static_node_features = jax.random.normal(k_s, (N, IN_GL), jnp.float32)
    dynamic_node_features = jax.random.normal(k_d, (N, IN_IMP), jnp.float32)

    x_hat = model.forward(static_node_features, dynamic_node_features,
                          edge_index, edge_weight)
    x_hat = jax.block_until_ready(x_hat)
    assert x_hat.shape == (N, IN_IMP) and jnp.all(jnp.isfinite(x_hat))

    x_ref = _reference_forward(model, static_node_features, dynamic_node_features,
                               edge_index, edge_weight)
    assert jnp.allclose(x_hat, x_ref, atol=1e-1, rtol=1e-1), "mismatch vs f32 reference"

    print("KERNEL_OK")
</pallas_src>

<mosaic_0001>
module attributes {stable_mosaic.version = 11 : i64} {
  func.func @kernel(%arg0: i32, %arg1: memref<4x128xbf16, #tpu.memory_space<vmem>>, %arg2: memref<16x4xbf16, #tpu.memory_space<vmem>>, %arg3: memref<16x1xf32, #tpu.memory_space<vmem>>, %arg4: memref<16x16xbf16, #tpu.memory_space<vmem>>, %arg5: memref<16x1xf32, #tpu.memory_space<vmem>>, %arg6: memref<1x16xbf16, #tpu.memory_space<vmem>>, %arg7: memref<1x1xf32, #tpu.memory_space<vmem>>, %arg8: memref<1x128xf32, #tpu.memory_space<vmem>>) attributes {dimension_semantics = [#tpu.dimension_semantics<parallel>], iteration_bounds = array<i64: 1>, scalar_prefetch = 0 : i64, scratch_operands = 0 : i64, tpu.core_type = #tpu.core_type<tc>, window_params = [{transform_indices = @transform_0, window_bounds = array<i64: 4, 128>}, {pipeline_mode = #tpu.pipeline_mode<synchronous>, transform_indices = @transform_1, window_bounds = array<i64: 16, 4>}, {pipeline_mode = #tpu.pipeline_mode<synchronous>, transform_indices = @transform_2, window_bounds = array<i64: 16, 1>}, {pipeline_mode = #tpu.pipeline_mode<synchronous>, transform_indices = @transform_3, window_bounds = array<i64: 16, 16>}, {pipeline_mode = #tpu.pipeline_mode<synchronous>, transform_indices = @transform_4, window_bounds = array<i64: 16, 1>}, {pipeline_mode = #tpu.pipeline_mode<synchronous>, transform_indices = @transform_5, window_bounds = array<i64: 1, 16>}, {pipeline_mode = #tpu.pipeline_mode<synchronous>, transform_indices = @transform_6, window_bounds = array<i64: 1, 1>}, {transform_indices = @transform_7, window_bounds = array<i64: 1, 128>}]} {
    %c0 = arith.constant 0 : index
    %c0_0 = arith.constant 0 : index
    %0 = vector.load %arg1[%c0, %c0_0] : memref<4x128xbf16, #tpu.memory_space<vmem>>, vector<4x128xbf16>
    %c0_1 = arith.constant 0 : index
    %c0_2 = arith.constant 0 : index
    %1 = vector.load %arg2[%c0_1, %c0_2] : memref<16x4xbf16, #tpu.memory_space<vmem>>, vector<16x4xbf16>
    %c0_3 = arith.constant 0 : index
    %c0_4 = arith.constant 0 : index
    %2 = vector.load %arg3[%c0_3, %c0_4] : memref<16x1xf32, #tpu.memory_space<vmem>>, vector<16x1xf32>
    %cst = arith.constant dense<0.000000e+00> : vector<16x128xf32>
    %3 = tpu.matmul %1, %0, %cst {dimension_numbers = #tpu.dot_dimension_numbers<[1], [0], [0], [1], [0, 0, 1, 1], [], []>} : vector<16x4xbf16>, vector<4x128xbf16>, vector<16x128xf32> -> vector<16x128xf32>
    %4 = vector.broadcast %2 : vector<16x1xf32> to vector<16x128xf32>
    %5 = arith.addf %3, %4 : vector<16x128xf32>
    %cst_5 = arith.constant 0.000000e+00 : f32
    %6 = vector.broadcast %cst_5 : f32 to vector<16x128xf32>
    %7 = arith.maximumf %5, %6 : vector<16x128xf32>
    %8 = arith.truncf %7 : vector<16x128xf32> to vector<16x128xbf16>
    %c0_6 = arith.constant 0 : index
    %c0_7 = arith.constant 0 : index
    %9 = vector.load %arg4[%c0_6, %c0_7] : memref<16x16xbf16, #tpu.memory_space<vmem>>, vector<16x16xbf16>
    %c0_8 = arith.constant 0 : index
    %c0_9 = arith.constant 0 : index
    %10 = vector.load %arg5[%c0_8, %c0_9] : memref<16x1xf32, #tpu.memory_space<vmem>>, vector<16x1xf32>
    %cst_10 = arith.constant dense<0.000000e+00> : vector<16x128xf32>
    %11 = tpu.matmul %9, %8, %cst_10 {dimension_numbers = #tpu.dot_dimension_numbers<[1], [0], [0], [1], [0, 0, 1, 1], [], []>} : vector<16x16xbf16>, vector<16x128xbf16>, vector<16x128xf32> -> vector<16x128xf32>
    %12 = vector.broadcast %10 : vector<16x1xf32> to vector<16x128xf32>
    %13 = arith.addf %11, %12 : vector<16x128xf32>
    %cst_11 = arith.constant 0.000000e+00 : f32
    %14 = vector.broadcast %cst_11 : f32 to vector<16x128xf32>
    %15 = arith.maximumf %13, %14 : vector<16x128xf32>
    %16 = arith.truncf %15 : vector<16x128xf32> to vector<16x128xbf16>
    %c0_12 = arith.constant 0 : index
    %c0_13 = arith.constant 0 : index
    %17 = vector.load %arg6[%c0_12, %c0_13] : memref<1x16xbf16, #tpu.memory_space<vmem>>, vector<1x16xbf16>
    %c0_14 = arith.constant 0 : index
    %c0_15 = arith.constant 0 : index
    %18 = vector.load %arg7[%c0_14, %c0_15] : memref<1x1xf32, #tpu.memory_space<vmem>>, vector<1x1xf32>
    %cst_16 = arith.constant dense<0.000000e+00> : vector<1x128xf32>
    %19 = tpu.matmul %17, %16, %cst_16 {dimension_numbers = #tpu.dot_dimension_numbers<[1], [0], [0], [1], [0, 0, 1, 1], [], []>} : vector<1x16xbf16>, vector<16x128xbf16>, vector<1x128xf32> -> vector<1x128xf32>
    %20 = vector.broadcast %18 : vector<1x1xf32> to vector<1x128xf32>
    %21 = arith.addf %19, %20 : vector<1x128xf32>
    %22 = arith.negf %21 : vector<1x128xf32>
    %23 = math.exp %22 : vector<1x128xf32>
    %cst_17 = arith.constant 1.000000e+00 : f32
    %24 = vector.broadcast %cst_17 : f32 to vector<1x128xf32>
    %25 = arith.addf %24, %23 : vector<1x128xf32>
    %26 = arith.divf %24, %25 : vector<1x128xf32>
    %c0_18 = arith.constant 0 : index
    %c0_19 = arith.constant 0 : index
    %27 = vector.load %arg8[%c0_18, %c0_19] : memref<1x128xf32, #tpu.memory_space<vmem>>, vector<1x128xf32>
    tpu.vector_store %arg8[%c0_18, %c0_19], %26 {strides = array<i32>} : memref<1x128xf32, #tpu.memory_space<vmem>>, vector<1x128xf32>,
    return
  }
  func.func @transform_0(%arg0: i32) -> (i32, i32) {
    %c0_i32 = arith.constant 0 : i32
    %c0_i32_0 = arith.constant 0 : i32
    return %c0_i32, %arg0 : i32, i32
  }
  func.func @transform_1(%arg0: i32) -> (i32, i32) {
    %c0_i32 = arith.constant 0 : i32
    %c0_i32_0 = arith.constant 0 : i32
    %c0_i32_1 = arith.constant 0 : i32
    return %c0_i32, %c0_i32_0 : i32, i32
  }
  func.func @transform_2(%arg0: i32) -> (i32, i32) {
    %c0_i32 = arith.constant 0 : i32
    %c0_i32_0 = arith.constant 0 : i32
    %c0_i32_1 = arith.constant 0 : i32
    return %c0_i32, %c0_i32_0 : i32, i32
  }
  func.func @transform_3(%arg0: i32) -> (i32, i32) {
    %c0_i32 = arith.constant 0 : i32
    %c0_i32_0 = arith.constant 0 : i32
    %c0_i32_1 = arith.constant 0 : i32
    return %c0_i32, %c0_i32_0 : i32, i32
  }
  func.func @transform_4(%arg0: i32) -> (i32, i32) {
    %c0_i32 = arith.constant 0 : i32
    %c0_i32_0 = arith.constant 0 : i32
    %c0_i32_1 = arith.constant 0 : i32
    return %c0_i32, %c0_i32_0 : i32, i32
  }
  func.func @transform_5(%arg0: i32) -> (i32, i32) {
    %c0_i32 = arith.constant 0 : i32
    %c0_i32_0 = arith.constant 0 : i32
    %c0_i32_1 = arith.constant 0 : i32
    return %c0_i32, %c0_i32_0 : i32, i32
  }
  func.func @transform_6(%arg0: i32) -> (i32, i32) {
    %c0_i32 = arith.constant 0 : i32
    %c0_i32_0 = arith.constant 0 : i32
    %c0_i32_1 = arith.constant 0 : i32
    return %c0_i32, %c0_i32_0 : i32, i32
  }
  func.func @transform_7(%arg0: i32) -> (i32, i32) {
    %c0_i32 = arith.constant 0 : i32
    %c0_i32_0 = arith.constant 0 : i32
    return %c0_i32, %arg0 : i32, i32
  }
}

</mosaic_0001>

<bundles_post_ra>
// kernel: tpu_custom_call.1
= control target key start
LH: loop header
LB: loop body
LE: loop exit
PB: predicated region body
PF: predicated region fallthrough
CT: control target
= control target key end

     0   :  { %s296_s0 = inlined_call_operand.vmem [shape: bf16[4,128], index: 0, kind: input, shape index: {}]   ;;  %s297_s1 = inlined_call_operand.vmem [shape: bf16[16,4], index: 1, kind: input, shape index: {}]   ;;  %s298_s2 = inlined_call_operand.vmem [shape: f32[16,1], index: 2, kind: input, shape index: {}]   ;;  %s299_s3 = inlined_call_operand.vmem [shape: bf16[16,16], index: 3, kind: input, shape index: {}]   ;;  %s300_s4 = inlined_call_operand.vmem [shape: f32[16,1], index: 4, kind: input, shape index: {}]   ;;  %s301_s5 = inlined_call_operand.vmem [shape: bf16[1,16], index: 5, kind: input, shape index: {}]   ;;  %s302_s6 = inlined_call_operand.<no memory space> [shape: f32[1,1], index: 6, kind: input, shape index: {}]   ;;  %s303_s7 = inlined_call_operand.hbm [shape: f32[1,128], index: 7, kind: output, shape index: {}]  }
   0x1   :  { %v12_v0 = vstv %s302_s6 }
   0x2   :  { %13 = vst [vmem:[#allocation2] sm:$0x1] %v12_v0 }
   0x3   :  { %v30_v1 = vld [vmem:[%s296_s0] sm:$0x3]  ;;  %vm54_vm0 = vcmask 1041408   ;;  %v224_v4 = vmov 0  }
   0x4   :  { %v56_v2 = vsel %vm54_vm0, %v30_v1, 0  ;;  %v187_v3 = vld [vmem:[%s297_s1] sm:$0xff]  ;;  %191 = vset.pattern.permute.xlu0 %v224_v4  ;;  %192 = vset.pattern.permute.xlu1 %v224_v4 }
   0x5   :  { %v33_v5 = vld [vmem:[%s298_s2] sm:$0xff] }
   0x6   :  { %14 = vsyncpa [#allocation4], 0  ;;  %65 = vmatpush.bf16.msra.mxu0 %v56_v2  ;;  %vm50_vm1 = vcmask 31744   ;;  %37 = vperm.xlu0 %191, %v33_v5   ;;  %v34_v6 = vld [vmem:[%s298_s2 + $0x8] sm:$0xff]  ;;  %v77_v7 = vld [vmem:[%s300_s4] sm:$0xff]  ;;  %vm94_vm2 = vcmask 130048  }
   0x7   :  { %193 = vset.pattern.permute.xlu2 %v224_v4  ;;  %81 = vperm.xlu1 %192, %v77_v7   ;;  %v78_v8 = vld [vmem:[%s300_s4 + $0x8] sm:$0xff]  ;;  %v188_v18 = vld [vmem:[%s299_s3] sm:$0xff]  ;;  %s225_s3 = smov [#allocation3]   ;;  %s166_s16 = sshll.u32 %s303_s7, 4  ;;  %s167_s16 = int_to_ptr.hbm [resolvable:$true] %s166_s16 }
   0x8   :  { %v115_v29 = vld [vmem:[%s301_s5] sm:$0x1]  ;;  %s164_s5 = sshll.u32 %s225_s3, 4  ;;  %s165_s5 = int_to_ptr.vmem [resolvable:$true] %s164_s5 }
   0x9   :  { %179 = vmatmul.msk.bf16.vlgmr.msra.gmra.mxu0 %vm50_vm1, %v187_v3  ;;  %v116_v19 = vld [vmem:[#allocation2] sm:$0x1] }
   0xa   :  { %119 = vperm.xlu2 %193, %v116_v19  }
   0xe   :  { %42 = vperm.xlu0 %191, %v34_v6  }
   0xf   :  { %86 = vperm.xlu1 %192, %v78_v8  }
  0x64   :  { %v120_v30 = vpop.permute.xlu2 %119 }
  0x65   :  { %v122_v31 = vperm.slane %v120_v30, 0 }
  0x78   :  { %v38_v9 = vpop.permute.xlu0 %37 }
  0x79   :  { %v82_v20 = vpop.permute.xlu1 %81 }
  0x80   :  { %v43_v12 = vpop.permute.xlu0 %42 }
  0x81   :  { %v87_v23 = vpop.permute.xlu1 %86 }
  0x86   :  { %v67_v10 = vpop.f32.mrf.mxu0 }
  0x87   :  { %v68_v11 = vadd.f32 %v67_v10, %v38_v9 }
  0x89   :  { %v72_v15 = vmax.f32 %v68_v11, 0.0 }
  0x8e   :  { %v69_v13 = vpop.f32.mrf.mxu0 }
  0x8f   :  { %v70_v14 = vadd.f32 %v69_v13, %v43_v12 }
  0x91   :  { %v73_v16 = vmax.f32 %v70_v14, 0.0 }
  0x93   :  { %v74_v17 = vpack.c.bf16 %v73_v16, %v72_v15 }
  0x95   :  { %105 = vmatpush.bf16.msra.mxu1 %v74_v17 }
  0x98   :  { %184 = vmatmul.msk.bf16.vlgmr.msra.gmra.mxu1 %vm94_vm2, %v188_v18 }
 0x115   :  { %v107_v21 = vpop.f32.mrf.mxu1 }
 0x116   :  { %v108_v22 = vadd.f32 %v107_v21, %v82_v20 }
 0x118   :  { %v112_v26 = vmax.f32 %v108_v22, 0.0 }
 0x11d   :  { %v109_v24 = vpop.f32.mrf.mxu1 }
 0x11e   :  { %v110_v25 = vadd.f32 %v109_v24, %v87_v23 }
 0x120   :  { %v113_v27 = vmax.f32 %v110_v25, 0.0 }
 0x122   :  { %v114_v28 = vpack.c.bf16 %v113_v27, %v112_v26 }
 0x124   :  { %133 = vmatpush.bf16.msra.mxu2 %v114_v28 }
 0x127   :  { %185 = vmatmul.msk.bf16.vlgmr.msra.gmra.mxu2 %vm94_vm2, %v115_v29 }
 0x1aa   :  { %v135_v32 = vpop.f32.mrf.mxu2 }
 0x1ab   :  { %v136_v33 = vadd.f32 %v135_v32, %v122_v31 }
 0x1ad   :  { %v186_v34 = vmul.f32 -1.442695, %v136_v33 }
 0x1af   :  { %194 = vpow2.f32 %v186_v34 }
 0x1b2   :  { %v137_v35 = vpop.f32.mrf.mxu2 }
 0x1b5   :  { %v195_v36 = vpop.eup %194 }
 0x1b6   :  { %v142_v37 = vadd.f32 1.0, %v195_v36 }
 0x1b8   :  { %196 = vrcp.f32 %v142_v37  ;;  %v154_v41 = vand.u32 2147483648, %v142_v37  ;;  %v152_v43 = vand.u32 2147483647, %v142_v37  ;;  %vm148_vm4 = vweird.f32 %v142_v37 }
 0x1ba   :  { %v155_v45 = vor.u32 1.1754944e-38, %v154_v41  ;;  %vm153_vm6 = vcmp.eq.f32.partialorder %v152_v43, 8.507059e+37 }
 0x1be   :  { %v197_v38 = vpop.eup %196 }
 0x1bf   :  { %v144_v39 = vmul.f32 %v197_v38, %v142_v37  ;;  %vm149_vm3 = vweird.f32 %v197_v38 }
 0x1c0   :  { %vm150_vm5 = vmor %vm148_vm4, %vm149_vm3 }
 0x1c1   :  { %v145_v40 = vsub.f32 1.0, %v144_v39 }
 0x1c3   :  { %v146_v42 = vmul.f32 %v197_v38, %v145_v40 }
 0x1c5   :  { %v147_v44 = vadd.f32 %v197_v38, %v146_v42 }
 0x1c7   :  { %v151_v46 = vsel %vm150_vm5, %v197_v38, %v147_v44 }
 0x1c8   :  { %v156_v47 = vsel %vm153_vm6, %v155_v45, %v151_v46 }
 0x1c9   :  { %158 = vst [vmem:[#allocation3] sm:$0x1] %v156_v47 }
 0x1ca   :  { %169 = dma.vmem_to_hbm [thread:$0]  %s165_s5, 16, %s167_s16, [#allocation4]  }
 0x1cb   :  { %222 = dma.done.wait [#allocation4], 16  }
 0x1cc   :  { %223 = vsyncadd [#allocation4], 4294967280 }
 0x1cd   :  { %174 = vsyncpa [#allocation4], 1 }

</bundles_post_ra>
